<compile_context>
chip_gen: v7x
topology: tpu7x:2x2x1
jax: 0.10.0
libtpu: 0.0.40
codegen_flags: <defaults>
</compile_context>

<pallas_src>
import jax
import jax.numpy as jnp
from jax.experimental import pallas as pl
from jax.experimental.pallas import tpu as pltpu


# ----------------------------- helpers ---------------------------------------

_TM_CAP = 512    # node-row tile cap (output rows per grid step)
_TK_CAP = 1024   # N-contraction tile cap for A_hat
_VMEM_LIMIT = 32 * 1024 * 1024  # safe on v5e/v6e/v7x; tiles use far less


def _round_up(x, m):
    return ((x + m - 1) // m) * m


def _pick_tile(n_pad, cap):
    """Largest multiple-of-128 divisor of n_pad that is <= cap (n_pad % 128 == 0)."""
    best = 128
    t = 128
    while t <= min(cap, n_pad):
        if n_pad % t == 0:
            best = t
        t += 128
    return best


# ----------------------------- Pallas kernels --------------------------------

def _gcn_layer_kernel(a_ref, h_ref, w_ref, b_ref, o_ref, acc_ref):
    """One torchdrug GraphConv layer on one graph block, tiled over
    (graph, row blocks, contraction blocks).

    a_ref: (1, tm, tk) bf16 tile of this graph's A_hat block
    h_ref: (1, tk, din_p) bf16 tile of this graph's node features
    w_ref: (din_p, dout_p) bf16 (whole transposed weight, resident)
    b_ref: (1, dout_p) f32
    o_ref: (1, tm, dout_p) out dtype (resident across the contraction axis)
    acc_ref: (tm, din_p) f32 VMEM scratch accumulator for A_hat @ H
    """
    k = pl.program_id(2)

    @pl.when(k == 0)
    def _init():
        acc_ref[...] = jnp.zeros_like(acc_ref)

    # Pure MXU accumulate over the within-graph N contraction
    # (bf16 inputs, f32 accumulation).
    acc_ref[...] += jnp.dot(a_ref[0], h_ref[0],
                            preferred_element_type=jnp.float32)

    @pl.when(k == pl.num_programs(2) - 1)
    def _finalize():
        # Small (tm, din_p) @ (din_p, dout_p) matmul + bias + relu, once per
        # row block.  bf16 x bf16 keeps the MXU on a single pass on all chips.
        lin = jnp.dot(acc_ref[...].astype(jnp.bfloat16), w_ref[...],
                      preferred_element_type=jnp.float32) + b_ref[...]
        o_ref[0] = jnp.maximum(lin, 0.0).astype(o_ref.dtype)


def gcn_layer(a_blocks, h_pad, w_pad_t, b_pad, *, tm, tk, out_dtype):
    """a_blocks: (G, n_g_pad, n_g_pad) bf16, h_pad: (G, n_g_pad, Din_p) bf16,
    w_pad_t: (Din_p, Dout_p) bf16, b_pad: (1, Dout_p) f32
    -> (G, n_g_pad, Dout_p) out_dtype."""
    g, n_g_pad, _ = a_blocks.shape
    din_p = h_pad.shape[-1]
    dout_p = w_pad_t.shape[-1]
    grid = (g, n_g_pad // tm, n_g_pad // tk)
    return pl.pallas_call(
        _gcn_layer_kernel,
        out_shape=jax.ShapeDtypeStruct((g, n_g_pad, dout_p), out_dtype),
        grid_spec=pltpu.PrefetchScalarGridSpec(
            num_scalar_prefetch=0,
            grid=grid,
            in_specs=[
                pl.BlockSpec((1, tm, tk), lambda gi, i, k: (gi, i, k)),        # A block tile
                pl.BlockSpec((1, tk, din_p), lambda gi, i, k: (gi, k, 0)),     # H tile
                pl.BlockSpec((din_p, dout_p), lambda gi, i, k: (0, 0)),        # W^T (resident)
                pl.BlockSpec((1, dout_p), lambda gi, i, k: (0, 0)),            # bias
            ],
            out_specs=pl.BlockSpec((1, tm, dout_p), lambda gi, i, k: (gi, i, 0)),
            scratch_shapes=[pltpu.VMEM((tm, din_p), jnp.float32)],
        ),
        compiler_params=pltpu.CompilerParams(
            dimension_semantics=("parallel", "parallel", "arbitrary"),
            vmem_limit_bytes=_VMEM_LIMIT,
        ),
    )(a_blocks, h_pad, w_pad_t, b_pad)


def _readout_kernel(m_ref, x_ref, o_ref):
    """Sum readout: one-hot membership matmul, accumulated over node tiles."""
    k = pl.program_id(0)

    @pl.when(k == 0)
    def _init():
        o_ref[...] = jnp.zeros_like(o_ref)

    o_ref[...] += jnp.dot(m_ref[...], x_ref[...],
                          preferred_element_type=jnp.float32)


def sum_readout(node2graph, nf_pad, *, num_graphs, nodes_per_graph, d_real):
    """node2graph: (N,) int, nf_pad: (G, n_g_pad, D_p) f32 -> (G, d_real) f32.

    Membership columns for padded node slots are zero, so the relu(b) garbage
    living in padded rows of nf_pad never reaches the graph sums.
    """
    g_cnt, n_g_pad, d_p = nf_pad.shape
    n = node2graph.shape[0]
    g_p = max(_round_up(num_graphs, 8), 8)
    n_total_pad = g_cnt * n_g_pad

    local = jnp.arange(n) - node2graph * nodes_per_graph
    pos = node2graph * n_g_pad + local
    membership = jnp.zeros((g_p, n_total_pad), jnp.float32)
    membership = membership.at[node2graph, pos].set(1.0)

    x_flat = nf_pad.reshape(n_total_pad, d_p)     # stays f32 for accuracy
    tk = _pick_tile(n_total_pad, _TK_CAP)

    out = pl.pallas_call(
        _readout_kernel,
        out_shape=jax.ShapeDtypeStruct((g_p, d_p), jnp.float32),
        grid_spec=pltpu.PrefetchScalarGridSpec(
            num_scalar_prefetch=0,
            grid=(n_total_pad // tk,),
            in_specs=[
                pl.BlockSpec((g_p, tk), lambda k: (0, k)),
                pl.BlockSpec((tk, d_p), lambda k: (k, 0)),
            ],
            out_specs=pl.BlockSpec((g_p, d_p), lambda k: (0, 0)),
        ),
        compiler_params=pltpu.CompilerParams(
            dimension_semantics=("arbitrary",),
            vmem_limit_bytes=_VMEM_LIMIT,
        ),
    )(membership, x_flat)
    return out[:num_graphs, :d_real]


# ----------------------------- Model (glue) ----------------------------------

def init_params(key, input_dim, hidden_dims):
    """nn.Linear-style deterministic init for each GraphConv's linear layer."""
    dims = [input_dim] + list(hidden_dims)
    params = []
    for i in range(len(dims) - 1):
        key, kw, kb = jax.random.split(key, 3)
        fan_in = dims[i]
        bound = 1.0 / jnp.sqrt(fan_in)
        w = jax.random.uniform(kw, (dims[i + 1], dims[i]),
                               minval=-bound, maxval=bound, dtype=jnp.float32)
        b = jax.random.uniform(kb, (dims[i + 1],),
                               minval=-bound, maxval=bound, dtype=jnp.float32)
        params.append((w, b))
    return params


def build_batched_normalized_adjacency(edge_src, edge_dst, edge_weight,
                                        num_graphs, nodes_per_graph, n_g_pad):
    """Batched per-graph dense A_hat matching torchdrug GraphConv normalization.

    torchdrug convention: an edge (u -> v) with weight w contributes
        A_hat[v, u] = w / sqrt((degree_in[u] + 1) * (degree_out[v] + 1))
    where degree_in[u] = total weight of edges with u as source and
    degree_out[v] = total weight of edges with v as target (no self loops);
    a weight-1 self loop per real node is then added with the same norm.

    Edges must be within-graph (block-diagonal batched graph); padded node
    rows/columns of each block are exactly zero.  Returns f32 (G, n_g_pad, n_g_pad).
    """
    g_of_edge = edge_src // nodes_per_graph
    src_local = edge_src % nodes_per_graph
    dst_local = edge_dst % nodes_per_graph
    a = jnp.zeros((num_graphs, n_g_pad, n_g_pad), dtype=jnp.float32)
    a = a.at[g_of_edge, dst_local, src_local].add(edge_weight)   # a[g, v, u] = sum w(u->v)
    deg_src = a.sum(axis=1)   # (G, n_g_pad): total weight leaving u  (torchdrug degree_in)
    deg_dst = a.sum(axis=2)   # (G, n_g_pad): total weight entering v (torchdrug degree_out)
    real = (jnp.arange(n_g_pad) < nodes_per_graph).astype(jnp.float32)
    eye_real = jnp.eye(n_g_pad, dtype=jnp.float32) * real[:, None]  # self loops, real nodes only
    a_self = a + eye_real[None]
    norm = (1.0 / jnp.sqrt(deg_dst + 1.0))[:, :, None] * \
           (1.0 / jnp.sqrt(deg_src + 1.0))[:, None, :]
    return a_self * norm


def torchdrug_gcn_forward(a_blocks, x, params, node2graph, *,
                          num_graphs, nodes_per_graph,
                          short_cut=False, concat_hidden=False):
    """Mirrors TorchDrugGCN.forward (relu activation, sum readout, no BN).

    a_blocks: (G, n_g_pad, n_g_pad) bf16 batched normalized adjacency (cast once
              at graph construction); x: (N, input_dim) f32 with nodes grouped
              contiguously per graph.
    """
    n, din0 = x.shape
    g, n_g_pad, _ = a_blocks.shape
    assert g == num_graphs and n == num_graphs * nodes_per_graph
    n_g = nodes_per_graph

    tm = _pick_tile(n_g_pad, _TM_CAP)
    tk = _pick_tile(n_g_pad, _TK_CAP)

    # Initial padded bf16 activations (only N x Din, done once).
    din0_p = _round_up(din0, 128)
    h = jnp.zeros((num_graphs, n_g_pad, din0_p), jnp.bfloat16)
    h = h.at[:, :n_g, :din0].set(
        x.reshape(num_graphs, n_g, din0).astype(jnp.bfloat16))

    hiddens_pad = []
    real_dims = []
    din_real = din0
    num_layers = len(params)
    for li, (w, b) in enumerate(params):
        dout, din = w.shape
        din_p = _round_up(din, 128)
        dout_p = _round_up(dout, 128)
        w_pad_t = jnp.zeros((din_p, dout_p), jnp.bfloat16)
        w_pad_t = w_pad_t.at[:din, :dout].set(w.T.astype(jnp.bfloat16))
        b_pad = jnp.zeros((1, dout_p), jnp.float32).at[0, :dout].set(b)

        last = li == num_layers - 1
        out_dtype = jnp.float32 if (last or concat_hidden) else jnp.bfloat16
        # NOTE: association is kept as (A@H)@W; after 128-padding Din_p == Dout_p
        # for these dims so A@(H@W) would give no FLOP/bandwidth savings here.
        hidden = gcn_layer(a_blocks, h, w_pad_t, b_pad,
                           tm=tm, tk=tk, out_dtype=out_dtype)

        # Shortcut compares REAL dims (padded shapes can coincide spuriously).
        if short_cut and dout == din_real:
            hidden = hidden + h.astype(hidden.dtype)

        hiddens_pad.append(hidden)
        real_dims.append(dout)
        din_real = dout
        if not last:
            h = hidden if hidden.dtype == jnp.bfloat16 else hidden.astype(jnp.bfloat16)

    if concat_hidden:
        node_feature = jnp.concatenate(
            [hp[:, :n_g, :d].reshape(n, d).astype(jnp.float32)
             for hp, d in zip(hiddens_pad, real_dims)], axis=-1)
        d_total = node_feature.shape[1]
        d_p = _round_up(d_total, 128)
        nf_pad = jnp.zeros((num_graphs, n_g_pad, d_p), jnp.float32)
        nf_pad = nf_pad.at[:, :n_g, :d_total].set(
            node_feature.reshape(num_graphs, n_g, d_total))
        d_real = d_total
    else:
        nf_pad = hiddens_pad[-1]                     # f32, already padded
        d_real = real_dims[-1]
        node_feature = nf_pad[:, :n_g, :d_real].reshape(n, d_real)

    graph_feature = sum_readout(node2graph, nf_pad, num_graphs=num_graphs,
                                nodes_per_graph=n_g, d_real=d_real)
    return {"graph_feature": graph_feature, "node_feature": node_feature}


def reference_forward(a_hat, node2graph, num_graphs, x, params,
                      short_cut=False, concat_hidden=False):
    """Pure f32 JAX reference (global dense A_hat) for validation."""
    hiddens = []
    h = x
    for w, b in params:
        hidden = jnp.maximum(a_hat @ h @ w.T + b, 0.0)
        if short_cut and hidden.shape == h.shape:
            hidden = hidden + h
        hiddens.append(hidden)
        h = hidden
    node_feature = jnp.concatenate(hiddens, -1) if concat_hidden else hiddens[-1]
    membership = jax.nn.one_hot(node2graph, num_graphs, dtype=jnp.float32).T
    graph_feature = membership @ node_feature
    return graph_feature, node_feature


# ----------------------------- Example run -----------------------------------

if __name__ == "__main__":
    key = jax.random.PRNGKey(0)

    # Batched synthetic graph: 6 graphs x 120 nodes (each padded to 128), so the
    # layer kernel runs a (6, 1, 1) grid over the block-diagonal A only.
    num_graphs = 6
    nodes_per_graph = 120
    num_nodes = num_graphs * nodes_per_graph
    input_dim = 16
    hidden_dims = [64, 32]
    edges_per_graph = 300

    key, k_src, k_dst, k_feat, k_param = jax.random.split(key, 5)
    # Random directed edges, kept within each graph (block-diagonal adjacency).
    src_local = jax.random.randint(k_src, (num_graphs, edges_per_graph),
                                   0, nodes_per_graph)
    dst_local = jax.random.randint(k_dst, (num_graphs, edges_per_graph),
                                   0, nodes_per_graph)
    offsets = (jnp.arange(num_graphs) * nodes_per_graph)[:, None]
    edge_src = (src_local + offsets).reshape(-1)
    edge_dst = (dst_local + offsets).reshape(-1)
    edge_weight = jnp.ones((edge_src.shape[0],), dtype=jnp.float32)

    node2graph = jnp.repeat(jnp.arange(num_graphs), nodes_per_graph)
    x = jax.random.normal(k_feat, (num_nodes, input_dim), dtype=jnp.float32)
    params = init_params(k_param, input_dim, hidden_dims)

    # Build A_hat directly in batched padded layout; cast to bf16 exactly once
    # (graph construction time), never materializing a dense (N, N) f32 matrix.
    n_g_pad = _round_up(nodes_per_graph, 128)
    a_blocks_f32 = build_batched_normalized_adjacency(
        edge_src, edge_dst, edge_weight, num_graphs, nodes_per_graph, n_g_pad)
    a_blocks = a_blocks_f32.astype(jnp.bfloat16)

    forward = jax.jit(
        torchdrug_gcn_forward,
        static_argnames=("num_graphs", "nodes_per_graph", "short_cut", "concat_hidden"))
    out = forward(a_blocks, x, params, node2graph,
                  num_graphs=num_graphs, nodes_per_graph=nodes_per_graph,
                  short_cut=False, concat_hidden=False)
    jax.block_until_ready(out)

    assert out["node_feature"].shape == (num_nodes, hidden_dims[-1])
    assert out["graph_feature"].shape == (num_graphs, hidden_dims[-1])

    # Validate against a pure-f32 JAX reference using the equivalent global
    # block-diagonal A_hat (bf16 A/H/W in the kernel -> loose tolerance).
    a_global = jnp.zeros((num_nodes, num_nodes), jnp.float32)
    for gi in range(num_graphs):
        s = gi * nodes_per_graph
        a_global = a_global.at[s:s + nodes_per_graph, s:s + nodes_per_graph].set(
            a_blocks_f32[gi, :nodes_per_graph, :nodes_per_graph])
    ref_gf, ref_nf = reference_forward(a_global, node2graph, num_graphs, x, params,
                                       short_cut=False, concat_hidden=False)
    assert jnp.allclose(out["node_feature"], ref_nf, rtol=1e-1, atol=1e-1)
    assert jnp.allclose(out["graph_feature"], ref_gf, rtol=1e-1, atol=1e-1)

    print("KERNEL_OK")
</pallas_src>

<mosaic_0001>
module attributes {stable_mosaic.version = 11 : i64} {
  func.func @_gcn_layer_kernel(%arg0: i32, %arg1: i32, %arg2: i32, %arg3: memref<1x128x128xbf16, #tpu.memory_space<vmem>>, %arg4: memref<1x128x128xbf16, #tpu.memory_space<vmem>>, %arg5: memref<128x128xbf16, #tpu.memory_space<vmem>>, %arg6: memref<1x128xf32, #tpu.memory_space<vmem>>, %arg7: memref<1x128x128xbf16, #tpu.memory_space<vmem>>, %arg8: memref<128x128xf32, #tpu.memory_space<vmem>>) attributes {dimension_semantics = [#tpu.dimension_semantics<parallel>, #tpu.dimension_semantics<parallel>, #tpu.dimension_semantics<arbitrary>], iteration_bounds = array<i64: 6, 1, 1>, scalar_prefetch = 0 : i64, scratch_operands = 1 : i64, tpu.core_type = #tpu.core_type<tc>, window_params = [{transform_indices = @transform_0, window_bounds = array<i64: 1, 128, 128>}, {transform_indices = @transform_1, window_bounds = array<i64: 1, 128, 128>}, {pipeline_mode = #tpu.pipeline_mode<synchronous>, transform_indices = @transform_2, window_bounds = array<i64: 128, 128>}, {pipeline_mode = #tpu.pipeline_mode<synchronous>, transform_indices = @transform_3, window_bounds = array<i64: 1, 128>}, {transform_indices = @transform_4, window_bounds = array<i64: 1, 128, 128>}]} {
    %c0_i32 = arith.constant 0 : i32
    %0 = arith.cmpi eq, %arg2, %c0_i32 : i32
    %1 = arith.extui %0 : i1 to i32
    %c0_i32_0 = arith.constant 0 : i32
    %2 = arith.cmpi ne, %1, %c0_i32_0 : i32
    scf.if %2 {
      %cst_12 = arith.constant 0.000000e+00 : f32
      %14 = vector.broadcast %cst_12 : f32 to vector<128x128xf32>
      %c0_13 = arith.constant 0 : index
      %c0_14 = arith.constant 0 : index
      %15 = vector.load %arg8[%c0_13, %c0_14] : memref<128x128xf32, #tpu.memory_space<vmem>>, vector<128x128xf32>
      tpu.vector_store %arg8[%c0_13, %c0_14], %14 {strides = array<i32>} : memref<128x128xf32, #tpu.memory_space<vmem>>, vector<128x128xf32>,
    } else {
    }
    %c0 = arith.constant 0 : index
    %c0_1 = arith.constant 0 : index
    %3 = vector.load %arg8[%c0, %c0_1] : memref<128x128xf32, #tpu.memory_space<vmem>>, vector<128x128xf32>
    %c0_2 = arith.constant 0 : index
    %c0_3 = arith.constant 0 : index
    %c0_4 = arith.constant 0 : index
    %4 = vector.load %arg3[%c0_2, %c0_3, %c0_4] : memref<1x128x128xbf16, #tpu.memory_space<vmem>>, vector<1x128x128xbf16>
    %5 = vector.shape_cast %4 : vector<1x128x128xbf16> to vector<128x128xbf16>
    %c0_5 = arith.constant 0 : index
    %c0_6 = arith.constant 0 : index
    %c0_7 = arith.constant 0 : index
    %6 = vector.load %arg4[%c0_5, %c0_6, %c0_7] : memref<1x128x128xbf16, #tpu.memory_space<vmem>>, vector<1x128x128xbf16>
    %7 = vector.shape_cast %6 : vector<1x128x128xbf16> to vector<128x128xbf16>
    %cst = arith.constant dense<0.000000e+00> : vector<128x128xf32>
    %8 = tpu.matmul %5, %7, %cst {dimension_numbers = #tpu.dot_dimension_numbers<[1], [0], [0], [1], [0, 0, 1, 1], [], []>} : vector<128x128xbf16>, vector<128x128xbf16>, vector<128x128xf32> -> vector<128x128xf32>
    %9 = arith.addf %3, %8 : vector<128x128xf32>
    %c0_8 = arith.constant 0 : index
    %c0_9 = arith.constant 0 : index
    %10 = vector.load %arg8[%c0_8, %c0_9] : memref<128x128xf32, #tpu.memory_space<vmem>>, vector<128x128xf32>
    tpu.vector_store %arg8[%c0_8, %c0_9], %9 {strides = array<i32>} : memref<128x128xf32, #tpu.memory_space<vmem>>, vector<128x128xf32>,
    %c0_i32_10 = arith.constant 0 : i32
    %11 = arith.cmpi eq, %arg2, %c0_i32_10 : i32
    %12 = arith.extui %11 : i1 to i32
    %c0_i32_11 = arith.constant 0 : i32
    %13 = arith.cmpi ne, %12, %c0_i32_11 : i32
    scf.if %13 {
      %c0_12 = arith.constant 0 : index
      %c0_13 = arith.constant 0 : index
      %14 = vector.load %arg8[%c0_12, %c0_13] : memref<128x128xf32, #tpu.memory_space<vmem>>, vector<128x128xf32>
      %15 = arith.truncf %14 : vector<128x128xf32> to vector<128x128xbf16>
      %c0_14 = arith.constant 0 : index
      %c0_15 = arith.constant 0 : index
      %16 = vector.load %arg5[%c0_14, %c0_15] : memref<128x128xbf16, #tpu.memory_space<vmem>>, vector<128x128xbf16>
      %cst_16 = arith.constant dense<0.000000e+00> : vector<128x128xf32>
      %17 = tpu.matmul %15, %16, %cst_16 {dimension_numbers = #tpu.dot_dimension_numbers<[1], [0], [0], [1], [0, 0, 1, 1], [], []>} : vector<128x128xbf16>, vector<128x128xbf16>, vector<128x128xf32> -> vector<128x128xf32>
      %c0_17 = arith.constant 0 : index
      %c0_18 = arith.constant 0 : index
      %18 = vector.load %arg6[%c0_17, %c0_18] : memref<1x128xf32, #tpu.memory_space<vmem>>, vector<1x128xf32>
      %19 = vector.broadcast %18 : vector<1x128xf32> to vector<128x128xf32>
      %20 = arith.addf %17, %19 : vector<128x128xf32>
      %cst_19 = arith.constant 0.000000e+00 : f32
      %21 = vector.broadcast %cst_19 : f32 to vector<128x128xf32>
      %22 = arith.maximumf %20, %21 : vector<128x128xf32>
      %23 = arith.truncf %22 : vector<128x128xf32> to vector<128x128xbf16>
      %c0_20 = arith.constant 0 : index
      %c0_21 = arith.constant 0 : index
      %c0_22 = arith.constant 0 : index
      %24 = vector.load %arg7[%c0_20, %c0_21, %c0_22] : memref<1x128x128xbf16, #tpu.memory_space<vmem>>, vector<1x128x128xbf16>
      %25 = vector.shape_cast %24 : vector<1x128x128xbf16> to vector<128x128xbf16>
      %26 = vector.shape_cast %23 : vector<128x128xbf16> to vector<1x128x128xbf16>
      tpu.vector_store %arg7[%c0_20, %c0_21, %c0_22], %26 {strides = array<i32>} : memref<1x128x128xbf16, #tpu.memory_space<vmem>>, vector<1x128x128xbf16>,
    } else {
    }
    return
  }
  func.func @transform_0(%arg0: i32, %arg1: i32, %arg2: i32) -> (i32, i32, i32) {
    %c0_i32 = arith.constant 0 : i32
    return %arg0, %arg1, %arg2 : i32, i32, i32
  }
  func.func @transform_1(%arg0: i32, %arg1: i32, %arg2: i32) -> (i32, i32, i32) {
    %c0_i32 = arith.constant 0 : i32
    %c0_i32_0 = arith.constant 0 : i32
    return %arg0, %arg2, %c0_i32 : i32, i32, i32
  }
  func.func @transform_2(%arg0: i32, %arg1: i32, %arg2: i32) -> (i32, i32) {
    %c0_i32 = arith.constant 0 : i32
    %c0_i32_0 = arith.constant 0 : i32
    %c0_i32_1 = arith.constant 0 : i32
    return %c0_i32, %c0_i32_0 : i32, i32
  }
  func.func @transform_3(%arg0: i32, %arg1: i32, %arg2: i32) -> (i32, i32) {
    %c0_i32 = arith.constant 0 : i32
    %c0_i32_0 = arith.constant 0 : i32
    %c0_i32_1 = arith.constant 0 : i32
    return %c0_i32, %c0_i32_0 : i32, i32
  }
  func.func @transform_4(%arg0: i32, %arg1: i32, %arg2: i32) -> (i32, i32, i32) {
    %c0_i32 = arith.constant 0 : i32
    %c0_i32_0 = arith.constant 0 : i32
    return %arg0, %arg1, %c0_i32 : i32, i32, i32
  }
}

module attributes {stable_mosaic.version = 11 : i64} {
  func.func @_gcn_layer_kernel(%arg0: i32, %arg1: i32, %arg2: i32, %arg3: memref<1x128x128xbf16, #tpu.memory_space<vmem>>, %arg4: memref<1x128x128xbf16, #tpu.memory_space<vmem>>, %arg5: memref<128x128xbf16, #tpu.memory_space<vmem>>, %arg6: memref<1x128xf32, #tpu.memory_space<vmem>>, %arg7: memref<1x128x128xf32, #tpu.memory_space<vmem>>, %arg8: memref<128x128xf32, #tpu.memory_space<vmem>>) attributes {dimension_semantics = [#tpu.dimension_semantics<parallel>, #tpu.dimension_semantics<parallel>, #tpu.dimension_semantics<arbitrary>], iteration_bounds = array<i64: 6, 1, 1>, scalar_prefetch = 0 : i64, scratch_operands = 1 : i64, tpu.core_type = #tpu.core_type<tc>, window_params = [{transform_indices = @transform_0, window_bounds = array<i64: 1, 128, 128>}, {transform_indices = @transform_1, window_bounds = array<i64: 1, 128, 128>}, {pipeline_mode = #tpu.pipeline_mode<synchronous>, transform_indices = @transform_2, window_bounds = array<i64: 128, 128>}, {pipeline_mode = #tpu.pipeline_mode<synchronous>, transform_indices = @transform_3, window_bounds = array<i64: 1, 128>}, {transform_indices = @transform_4, window_bounds = array<i64: 1, 128, 128>}]} {
    %c0_i32 = arith.constant 0 : i32
    %0 = arith.cmpi eq, %arg2, %c0_i32 : i32
    %1 = arith.extui %0 : i1 to i32
    %c0_i32_0 = arith.constant 0 : i32
    %2 = arith.cmpi ne, %1, %c0_i32_0 : i32
    scf.if %2 {
      %cst_12 = arith.constant 0.000000e+00 : f32
      %14 = vector.broadcast %cst_12 : f32 to vector<128x128xf32>
      %c0_13 = arith.constant 0 : index
      %c0_14 = arith.constant 0 : index
      %15 = vector.load %arg8[%c0_13, %c0_14] : memref<128x128xf32, #tpu.memory_space<vmem>>, vector<128x128xf32>
      tpu.vector_store %arg8[%c0_13, %c0_14], %14 {strides = array<i32>} : memref<128x128xf32, #tpu.memory_space<vmem>>, vector<128x128xf32>,
    } else {
    }
    %c0 = arith.constant 0 : index
    %c0_1 = arith.constant 0 : index
    %3 = vector.load %arg8[%c0, %c0_1] : memref<128x128xf32, #tpu.memory_space<vmem>>, vector<128x128xf32>
    %c0_2 = arith.constant 0 : index
    %c0_3 = arith.constant 0 : index
    %c0_4 = arith.constant 0 : index
    %4 = vector.load %arg3[%c0_2, %c0_3, %c0_4] : memref<1x128x128xbf16, #tpu.memory_space<vmem>>, vector<1x128x128xbf16>
    %5 = vector.shape_cast %4 : vector<1x128x128xbf16> to vector<128x128xbf16>
    %c0_5 = arith.constant 0 : index
    %c0_6 = arith.constant 0 : index
    %c0_7 = arith.constant 0 : index
    %6 = vector.load %arg4[%c0_5, %c0_6, %c0_7] : memref<1x128x128xbf16, #tpu.memory_space<vmem>>, vector<1x128x128xbf16>
    %7 = vector.shape_cast %6 : vector<1x128x128xbf16> to vector<128x128xbf16>
    %cst = arith.constant dense<0.000000e+00> : vector<128x128xf32>
    %8 = tpu.matmul %5, %7, %cst {dimension_numbers = #tpu.dot_dimension_numbers<[1], [0], [0], [1], [0, 0, 1, 1], [], []>} : vector<128x128xbf16>, vector<128x128xbf16>, vector<128x128xf32> -> vector<128x128xf32>
    %9 = arith.addf %3, %8 : vector<128x128xf32>
    %c0_8 = arith.constant 0 : index
    %c0_9 = arith.constant 0 : index
    %10 = vector.load %arg8[%c0_8, %c0_9] : memref<128x128xf32, #tpu.memory_space<vmem>>, vector<128x128xf32>
    tpu.vector_store %arg8[%c0_8, %c0_9], %9 {strides = array<i32>} : memref<128x128xf32, #tpu.memory_space<vmem>>, vector<128x128xf32>,
    %c0_i32_10 = arith.constant 0 : i32
    %11 = arith.cmpi eq, %arg2, %c0_i32_10 : i32
    %12 = arith.extui %11 : i1 to i32
    %c0_i32_11 = arith.constant 0 : i32
    %13 = arith.cmpi ne, %12, %c0_i32_11 : i32
    scf.if %13 {
      %c0_12 = arith.constant 0 : index
      %c0_13 = arith.constant 0 : index
      %14 = vector.load %arg8[%c0_12, %c0_13] : memref<128x128xf32, #tpu.memory_space<vmem>>, vector<128x128xf32>
      %15 = arith.truncf %14 : vector<128x128xf32> to vector<128x128xbf16>
      %c0_14 = arith.constant 0 : index
      %c0_15 = arith.constant 0 : index
      %16 = vector.load %arg5[%c0_14, %c0_15] : memref<128x128xbf16, #tpu.memory_space<vmem>>, vector<128x128xbf16>
      %cst_16 = arith.constant dense<0.000000e+00> : vector<128x128xf32>
      %17 = tpu.matmul %15, %16, %cst_16 {dimension_numbers = #tpu.dot_dimension_numbers<[1], [0], [0], [1], [0, 0, 1, 1], [], []>} : vector<128x128xbf16>, vector<128x128xbf16>, vector<128x128xf32> -> vector<128x128xf32>
      %c0_17 = arith.constant 0 : index
      %c0_18 = arith.constant 0 : index
      %18 = vector.load %arg6[%c0_17, %c0_18] : memref<1x128xf32, #tpu.memory_space<vmem>>, vector<1x128xf32>
      %19 = vector.broadcast %18 : vector<1x128xf32> to vector<128x128xf32>
      %20 = arith.addf %17, %19 : vector<128x128xf32>
      %cst_19 = arith.constant 0.000000e+00 : f32
      %21 = vector.broadcast %cst_19 : f32 to vector<128x128xf32>
      %22 = arith.maximumf %20, %21 : vector<128x128xf32>
      %c0_20 = arith.constant 0 : index
      %c0_21 = arith.constant 0 : index
      %c0_22 = arith.constant 0 : index
      %23 = vector.load %arg7[%c0_20, %c0_21, %c0_22] : memref<1x128x128xf32, #tpu.memory_space<vmem>>, vector<1x128x128xf32>
      %24 = vector.shape_cast %23 : vector<1x128x128xf32> to vector<128x128xf32>
      %25 = vector.shape_cast %22 : vector<128x128xf32> to vector<1x128x128xf32>
      tpu.vector_store %arg7[%c0_20, %c0_21, %c0_22], %25 {strides = array<i32>} : memref<1x128x128xf32, #tpu.memory_space<vmem>>, vector<1x128x128xf32>,
    } else {
    }
    return
  }
  func.func @transform_0(%arg0: i32, %arg1: i32, %arg2: i32) -> (i32, i32, i32) {
    %c0_i32 = arith.constant 0 : i32
    return %arg0, %arg1, %arg2 : i32, i32, i32
  }
  func.func @transform_1(%arg0: i32, %arg1: i32, %arg2: i32) -> (i32, i32, i32) {
    %c0_i32 = arith.constant 0 : i32
    %c0_i32_0 = arith.constant 0 : i32
    return %arg0, %arg2, %c0_i32 : i32, i32, i32
  }
  func.func @transform_2(%arg0: i32, %arg1: i32, %arg2: i32) -> (i32, i32) {
    %c0_i32 = arith.constant 0 : i32
    %c0_i32_0 = arith.constant 0 : i32
    %c0_i32_1 = arith.constant 0 : i32
    return %c0_i32, %c0_i32_0 : i32, i32
  }
  func.func @transform_3(%arg0: i32, %arg1: i32, %arg2: i32) -> (i32, i32) {
    %c0_i32 = arith.constant 0 : i32
    %c0_i32_0 = arith.constant 0 : i32
    %c0_i32_1 = arith.constant 0 : i32
    return %c0_i32, %c0_i32_0 : i32, i32
  }
  func.func @transform_4(%arg0: i32, %arg1: i32, %arg2: i32) -> (i32, i32, i32) {
    %c0_i32 = arith.constant 0 : i32
    %c0_i32_0 = arith.constant 0 : i32
    return %arg0, %arg1, %c0_i32 : i32, i32, i32
  }
}

module attributes {stable_mosaic.version = 11 : i64} {
  func.func @_readout_kernel(%arg0: i32, %arg1: memref<8x768xf32, #tpu.memory_space<vmem>>, %arg2: memref<768x128xf32, #tpu.memory_space<vmem>>, %arg3: memref<8x128xf32, #tpu.memory_space<vmem>>) attributes {dimension_semantics = [#tpu.dimension_semantics<arbitrary>], iteration_bounds = array<i64: 1>, scalar_prefetch = 0 : i64, scratch_operands = 0 : i64, tpu.core_type = #tpu.core_type<tc>, window_params = [{transform_indices = @transform_0, window_bounds = array<i64: 8, 768>}, {transform_indices = @transform_1, window_bounds = array<i64: 768, 128>}, {pipeline_mode = #tpu.pipeline_mode<synchronous>, transform_indices = @transform_2, window_bounds = array<i64: 8, 128>}]} {
    %c0_i32 = arith.constant 0 : i32
    %0 = arith.cmpi eq, %arg0, %c0_i32 : i32
    %1 = arith.extui %0 : i1 to i32
    %c0_i32_0 = arith.constant 0 : i32
    %2 = arith.cmpi ne, %1, %c0_i32_0 : i32
    scf.if %2 {
      %cst_8 = arith.constant 0.000000e+00 : f32
      %9 = vector.broadcast %cst_8 : f32 to vector<8x128xf32>
      %c0_9 = arith.constant 0 : index
      %c0_10 = arith.constant 0 : index
      %10 = vector.load %arg3[%c0_9, %c0_10] : memref<8x128xf32, #tpu.memory_space<vmem>>, vector<8x128xf32>
      tpu.vector_store %arg3[%c0_9, %c0_10], %9 {strides = array<i32>} : memref<8x128xf32, #tpu.memory_space<vmem>>, vector<8x128xf32>,
    } else {
    }
    %c0 = arith.constant 0 : index
    %c0_1 = arith.constant 0 : index
    %3 = vector.load %arg3[%c0, %c0_1] : memref<8x128xf32, #tpu.memory_space<vmem>>, vector<8x128xf32>
    %c0_2 = arith.constant 0 : index
    %c0_3 = arith.constant 0 : index
    %4 = vector.load %arg1[%c0_2, %c0_3] : memref<8x768xf32, #tpu.memory_space<vmem>>, vector<8x768xf32>
    %c0_4 = arith.constant 0 : index
    %c0_5 = arith.constant 0 : index
    %5 = vector.load %arg2[%c0_4, %c0_5] : memref<768x128xf32, #tpu.memory_space<vmem>>, vector<768x128xf32>
    %cst = arith.constant dense<0.000000e+00> : vector<8x128xf32>
    %6 = tpu.matmul %4, %5, %cst {dimension_numbers = #tpu.dot_dimension_numbers<[1], [0], [0], [1], [0, 0, 1, 1], [], []>} : vector<8x768xf32>, vector<768x128xf32>, vector<8x128xf32> -> vector<8x128xf32>
    %7 = arith.addf %3, %6 : vector<8x128xf32>
    %c0_6 = arith.constant 0 : index
    %c0_7 = arith.constant 0 : index
    %8 = vector.load %arg3[%c0_6, %c0_7] : memref<8x128xf32, #tpu.memory_space<vmem>>, vector<8x128xf32>
    tpu.vector_store %arg3[%c0_6, %c0_7], %7 {strides = array<i32>} : memref<8x128xf32, #tpu.memory_space<vmem>>, vector<8x128xf32>,
    return
  }
  func.func @transform_0(%arg0: i32) -> (i32, i32) {
    %c0_i32 = arith.constant 0 : i32
    %c0_i32_0 = arith.constant 0 : i32
    return %c0_i32, %arg0 : i32, i32
  }
  func.func @transform_1(%arg0: i32) -> (i32, i32) {
    %c0_i32 = arith.constant 0 : i32
    %c0_i32_0 = arith.constant 0 : i32
    return %arg0, %c0_i32 : i32, i32
  }
  func.func @transform_2(%arg0: i32) -> (i32, i32) {
    %c0_i32 = arith.constant 0 : i32
    %c0_i32_0 = arith.constant 0 : i32
    %c0_i32_1 = arith.constant 0 : i32
    return %c0_i32, %c0_i32_0 : i32, i32
  }
}

</mosaic_0001>

<bundles_post_ra>
// kernel: torchdrug_gcn_forward.5
= control target key start
LH: loop header
LB: loop body
LE: loop exit
PB: predicated region body
PF: predicated region fallthrough
CT: control target
= control target key end

     0   :  { %s907_s0 = inlined_call_operand.vmem [shape: f32[8,768], index: 0, kind: input, shape index: {}]   ;;  %s908_s1 = inlined_call_operand.vmem [shape: f32[768,128], index: 1, kind: input, shape index: {}]   ;;  %s909_s2 = inlined_call_operand.hbm [shape: f32[8,128], index: 2, kind: output, shape index: {}]  }
   0x1   :  { %v40_v0 = vld [vmem:[%s908_s1 + $0x80] sm:$0xff]  ;;  %v41_v1 = vld [vmem:[%s908_s1 + $0x88] sm:$0xff]  ;;  %v42_v11 = vld [vmem:[%s908_s1 + $0x90] sm:$0xff] }
   0x2   :  { %v72_v2 = vld [vmem:[%s908_s1 + $0x180] sm:$0xff]  ;;  %v451_v3 = vpack.c.bf16 %v41_v1, %v40_v0  ;;  %v73_v4 = vld [vmem:[%s908_s1 + $0x188] sm:$0xff]  ;;  %v43_v13 = vld [vmem:[%s908_s1 + $0x98] sm:$0xff] }
   0x3   :  { %v24_v5 = vld [vmem:[%s908_s1] sm:$0xff]  ;;  %v25_v6 = vld [vmem:[%s908_s1 + $0x8] sm:$0xff]  ;;  %v483_v7 = vpack.c.bf16 %v73_v4, %v72_v2  ;;  %v74_v14 = vld [vmem:[%s908_s1 + $0x190] sm:$0xff]  ;;  %v455_v16 = vpack.c.bf16 %v43_v13, %v42_v11 }
   0x4   :  { %v453_v8 = vpack.c.bf16 %v25_v6, %v24_v5  ;;  %v56_v9 = vld [vmem:[%s908_s1 + $0x100] sm:$0xff]  ;;  %v57_v10 = vld [vmem:[%s908_s1 + $0x108] sm:$0xff]  ;;  %452 = vmatprep.subr.bf16.mxu0 %v451_v3  ;;  %v75_v15 = vld [vmem:[%s908_s1 + $0x198] sm:$0xff] }
   0x5   :  { %v485_v12 = vpack.c.bf16 %v57_v10, %v56_v9  ;;  %484 = vmatprep.subr.bf16.mxu1 %v483_v7  ;;  %v487_v17 = vpack.c.bf16 %v75_v15, %v74_v14  ;;  %v26_v18 = vld [vmem:[%s908_s1 + $0x10] sm:$0xff]  ;;  %v27_v19 = vld [vmem:[%s908_s1 + $0x18] sm:$0xff]  ;;  %v44_v23 = vld [vmem:[%s908_s1 + $0xa0] sm:$0xff] }
   0x6   :  { %454 = vmatpush3.bf16.msra.mxu0 %v453_v8  ;;  %v58_v20 = vld [vmem:[%s908_s1 + $0x110] sm:$0xff]  ;;  %v457_v21 = vpack.c.bf16 %v27_v19, %v26_v18  ;;  %v59_v22 = vld [vmem:[%s908_s1 + $0x118] sm:$0xff]  ;;  %v45_v24 = vld [vmem:[%s908_s1 + $0xa8] sm:$0xff] }
   0x7   :  { %486 = vmatpush3.bf16.msra.mxu1 %v485_v12  ;;  %456 = vmatprep.subr.bf16.mxu0 %v455_v16  ;;  %v489_v25 = vpack.c.bf16 %v59_v22, %v58_v20  ;;  %v459_v26 = vpack.c.bf16 %v45_v24, %v44_v23  ;;  %v76_v27 = vld [vmem:[%s908_s1 + $0x1a0] sm:$0xff]  ;;  %v77_v28 = vld [vmem:[%s908_s1 + $0x1a8] sm:$0xff]  ;;  %v46_v35 = vld [vmem:[%s908_s1 + $0xb0] sm:$0xff] }
   0x8   :  { %488 = vmatprep.subr.bf16.mxu1 %v487_v17  ;;  %v28_v29 = vld [vmem:[%s908_s1 + $0x20] sm:$0xff]  ;;  %v491_v30 = vpack.c.bf16 %v77_v28, %v76_v27  ;;  %v29_v31 = vld [vmem:[%s908_s1 + $0x28] sm:$0xff]  ;;  %v47_v36 = vld [vmem:[%s908_s1 + $0xb8] sm:$0xff] }
   0x9   :  { %v60_v32 = vld [vmem:[%s908_s1 + $0x120] sm:$0xff]  ;;  %v61_v33 = vld [vmem:[%s908_s1 + $0x128] sm:$0xff]  ;;  %v461_v34 = vpack.c.bf16 %v29_v31, %v28_v29  ;;  %v78_v37 = vld [vmem:[%s908_s1 + $0x1b0] sm:$0xff]  ;;  %v463_v39 = vpack.c.bf16 %v47_v36, %v46_v35 }
   0xa   :  { %458 = vmatpush3.bf16.msra.mxu0 %v457_v21  ;;  %v493_v38 = vpack.c.bf16 %v61_v33, %v60_v32  ;;  %v79_v40 = vld [vmem:[%s908_s1 + $0x1b8] sm:$0xff]  ;;  %v30_v41 = vld [vmem:[%s908_s1 + $0x30] sm:$0xff]  ;;  %v48_v46 = vld [vmem:[%s908_s1 + $0xc0] sm:$0xff] }
   0xb   :  { %490 = vmatpush3.bf16.msra.mxu1 %v489_v25  ;;  %460 = vmatprep.subr.bf16.mxu0 %v459_v26  ;;  %v31_v42 = vld [vmem:[%s908_s1 + $0x38] sm:$0xff]  ;;  %v495_v43 = vpack.c.bf16 %v79_v40, %v78_v37  ;;  %v62_v44 = vld [vmem:[%s908_s1 + $0x130] sm:$0xff]  ;;  %v49_v47 = vld [vmem:[%s908_s1 + $0xc8] sm:$0xff] }
   0xc   :  { %492 = vmatprep.subr.bf16.mxu1 %v491_v30  ;;  %v63_v45 = vld [vmem:[%s908_s1 + $0x138] sm:$0xff]  ;;  %v80_v48 = vld [vmem:[%s908_s1 + $0x1c0] sm:$0xff]  ;;  %v81_v49 = vld [vmem:[%s908_s1 + $0x1c8] sm:$0xff]  ;;  %v465_v50 = vpack.c.bf16 %v31_v42, %v30_v41  ;;  %v467_v52 = vpack.c.bf16 %v49_v47, %v48_v46 }
   0xd   :  { %v497_v51 = vpack.c.bf16 %v63_v45, %v62_v44  ;;  %v32_v53 = vld [vmem:[%s908_s1 + $0x40] sm:$0xff]  ;;  %v33_v54 = vld [vmem:[%s908_s1 + $0x48] sm:$0xff]  ;;  %v499_v56 = vpack.c.bf16 %v81_v49, %v80_v48  ;;  %v50_v58 = vld [vmem:[%s908_s1 + $0xd0] sm:$0xff] }
   0xe   :  { %462 = vmatpush3.bf16.msra.mxu0 %v461_v34  ;;  %v64_v55 = vld [vmem:[%s908_s1 + $0x140] sm:$0xff]  ;;  %v65_v57 = vld [vmem:[%s908_s1 + $0x148] sm:$0xff]  ;;  %v51_v59 = vld [vmem:[%s908_s1 + $0xd8] sm:$0xff]  ;;  %v469_v62 = vpack.c.bf16 %v33_v54, %v32_v53 }
   0xf   :  { %494 = vmatpush3.bf16.msra.mxu1 %v493_v38  ;;  %464 = vmatprep.subr.bf16.mxu0 %v463_v39  ;;  %v82_v60 = vld [vmem:[%s908_s1 + $0x1d0] sm:$0xff]  ;;  %v83_v61 = vld [vmem:[%s908_s1 + $0x1d8] sm:$0xff]  ;;  %v501_v63 = vpack.c.bf16 %v65_v57, %v64_v55  ;;  %v471_v0 = vpack.c.bf16 %v51_v59, %v50_v58  ;;  %v52_v6 = vld [vmem:[%s908_s1 + $0xe0] sm:$0xff] }
  0x10   :  { %496 = vmatprep.subr.bf16.mxu1 %v495_v43  ;;  %v34_v1 = vld [vmem:[%s908_s1 + $0x50] sm:$0xff]  ;;  %v35_v2 = vld [vmem:[%s908_s1 + $0x58] sm:$0xff]  ;;  %v503_v4 = vpack.c.bf16 %v83_v61, %v82_v60  ;;  %v53_v7 = vld [vmem:[%s908_s1 + $0xe8] sm:$0xff] }
  0x11   :  { %v66_v3 = vld [vmem:[%s908_s1 + $0x150] sm:$0xff]  ;;  %v67_v5 = vld [vmem:[%s908_s1 + $0x158] sm:$0xff]  ;;  %v84_v8 = vld [vmem:[%s908_s1 + $0x1e0] sm:$0xff]  ;;  %v473_v10 = vpack.c.bf16 %v35_v2, %v34_v1  ;;  %v475_v14 = vpack.c.bf16 %v53_v7, %v52_v6 }
  0x12   :  { %466 = vmatpush3.bf16.msra.mxu0 %v465_v50  ;;  %v85_v9 = vld [vmem:[%s908_s1 + $0x1e8] sm:$0xff]  ;;  %v36_v11 = vld [vmem:[%s908_s1 + $0x60] sm:$0xff]  ;;  %v505_v13 = vpack.c.bf16 %v67_v5, %v66_v3  ;;  %v21_v17 = vld [vmem:[%s907_s0 + $0x18] sm:$0xff] }
  0x13   :  { %498 = vmatpush3.bf16.msra.mxu1 %v497_v51  ;;  %468 = vmatprep.subr.bf16.mxu0 %v467_v52  ;;  %v37_v12 = vld [vmem:[%s908_s1 + $0x68] sm:$0xff]  ;;  %v68_v15 = vld [vmem:[%s908_s1 + $0x160] sm:$0xff]  ;;  %v507_v18 = vpack.c.bf16 %v85_v9, %v84_v8  ;;  %v54_v20 = vld [vmem:[%s908_s1 + $0xf0] sm:$0xff] }
  0x14   :  { %500 = vmatprep.subr.bf16.mxu1 %v499_v56  ;;  %v19_v16 = vld [vmem:[%s907_s0 + $0x8] sm:$0xff]  ;;  %v55_v21 = vld [vmem:[%s908_s1 + $0xf8] sm:$0xff]  ;;  %v86_v22 = vld [vmem:[%s908_s1 + $0x1f0] sm:$0xff]  ;;  %254 = vmatprep.mubr.f32.mxu1 %v21_v17  ;;  %v477_v24 = vpack.c.bf16 %v37_v12, %v36_v11 }
  0x15   :  { %v69_v19 = vld [vmem:[%s908_s1 + $0x168] sm:$0xff]  ;;  %184 = vmatprep.mubr.f32.mxu0 %v19_v16  ;;  %v87_v23 = vld [vmem:[%s908_s1 + $0x1f8] sm:$0xff]  ;;  %v479_v26 = vpack.c.bf16 %v55_v21, %v54_v20  ;;  %v38_v27 = vld [vmem:[%s908_s1 + $0x70] sm:$0xff] }
  0x16   :  { %470 = vmatpush3.bf16.msra.mxu0 %v469_v62  ;;  %v509_v25 = vpack.c.bf16 %v69_v19, %v68_v15  ;;  %v39_v28 = vld [vmem:[%s908_s1 + $0x78] sm:$0xff]  ;;  %v70_v29 = vld [vmem:[%s908_s1 + $0x170] sm:$0xff]  ;;  %v511_v30 = vpack.c.bf16 %v87_v23, %v86_v22  ;;  %v104_v32 = vld [vmem:[%s908_s1 + $0x280] sm:$0xff] }
  0x17   :  { %502 = vmatpush3.bf16.msra.mxu1 %v501_v63  ;;  %472 = vmatprep.subr.bf16.mxu0 %v471_v0  ;;  %v71_v31 = vld [vmem:[%s908_s1 + $0x178] sm:$0xff]  ;;  %v105_v33 = vld [vmem:[%s908_s1 + $0x288] sm:$0xff]  ;;  %v481_v34 = vpack.c.bf16 %v39_v28, %v38_v27  ;;  %v88_v37 = vld [vmem:[%s908_s1 + $0x200] sm:$0xff] }
  0x18   :  { %504 = vmatprep.subr.bf16.mxu1 %v503_v4  ;;  %v513_v35 = vpack.c.bf16 %v71_v31, %v70_v29  ;;  %v515_v36 = vpack.c.bf16 %v105_v33, %v104_v32  ;;  %v89_v38 = vld [vmem:[%s908_s1 + $0x208] sm:$0xff]  ;;  %v106_v39 = vld [vmem:[%s908_s1 + $0x290] sm:$0xff]  ;;  %v107_v40 = vld [vmem:[%s908_s1 + $0x298] sm:$0xff] }
  0x19   :  { %v18_v41 = vld [vmem:[%s907_s0] sm:$0xff]  ;;  %v20_v42 = vld [vmem:[%s907_s0 + $0x10] sm:$0xff]  ;;  %v517_v43 = vpack.c.bf16 %v89_v38, %v88_v37  ;;  %v519_v44 = vpack.c.bf16 %v107_v40, %v106_v39  ;;  %v91_v46 = vld [vmem:[%s908_s1 + $0x218] sm:$0xff] }
  0x1a   :  { %474 = vmatpush3.bf16.msra.mxu0 %v473_v10  ;;  %v90_v45 = vld [vmem:[%s908_s1 + $0x210] sm:$0xff]  ;;  %v108_v47 = vld [vmem:[%s908_s1 + $0x2a0] sm:$0xff]  ;;  %v109_v48 = vld [vmem:[%s908_s1 + $0x2a8] sm:$0xff] }
  0x1b   :  { %506 = vmatpush3.bf16.msra.mxu1 %v505_v13  ;;  %476 = vmatprep.subr.bf16.mxu0 %v475_v14  ;;  %v23_v49 = vld [vmem:[%s907_s0 + $0x28] sm:$0xff] }
  0x1c   :  { %508 = vmatprep.subr.bf16.mxu1 %v507_v18 }
  0x1e   :  { %478 = vmatpush3.bf16.msra.mxu0 %v477_v24 }
  0x1f   :  { %510 = vmatpush3.bf16.msra.mxu1 %v509_v25  ;;  %480 = vmatprep.subr.bf16.mxu0 %v479_v26 }
  0x20   :  { %512 = vmatprep.subr.bf16.mxu1 %v511_v30 }
  0x22   :  { %482 = vmatpush3.bf16.msra.mxu0 %v481_v34 }
  0x23   :  { %514 = vmatpush3.bf16.msra.mxu1 %v513_v35  ;;  %516 = vmatprep.subr.bf16.mxu0 %v515_v36 }
  0x24   :  { %7 = vsyncpa [#allocation3], 0  ;;  %v521_v50 = vpack.c.bf16 %v91_v46, %v90_v45  ;;  %v523_v51 = vpack.c.bf16 %v109_v48, %v108_v47  ;;  %v92_v52 = vld [vmem:[%s908_s1 + $0x220] sm:$0xff]  ;;  %v93_v53 = vld [vmem:[%s908_s1 + $0x228] sm:$0xff] }
  0x25   :  { %185 = vmatmul.mubr.f32.vlgmr.msra.gmra.mrb[0].mxu0 %v18_v41  ;;  %v110_v54 = vld [vmem:[%s908_s1 + $0x2b0] sm:$0xff]  ;;  %v111_v55 = vld [vmem:[%s908_s1 + $0x2b8] sm:$0xff]  ;;  %v525_v56 = vpack.c.bf16 %v93_v53, %v92_v52  ;;  %v112_v60 = vld [vmem:[%s908_s1 + $0x2c0] sm:$0xff] }
  0x26   :  { %255 = vmatmul.mubr.f32.vlgmr.msra.gmra.mrb[0].mxu1 %v20_v42  ;;  %518 = vmatpush3.bf16.msra.mxu0 %v517_v43  ;;  %v527_v57 = vpack.c.bf16 %v111_v55, %v110_v54  ;;  %v94_v58 = vld [vmem:[%s908_s1 + $0x230] sm:$0xff]  ;;  %v95_v59 = vld [vmem:[%s908_s1 + $0x238] sm:$0xff]  ;;  %v113_v61 = vld [vmem:[%s908_s1 + $0x2c8] sm:$0xff] }
  0x27   :  { %520 = vmatprep.subr.bf16.mxu0 %v519_v44  ;;  %324 = vmatprep.mubr.f32.mxu0 %v23_v49  ;;  %v529_v62 = vpack.c.bf16 %v95_v59, %v94_v58  ;;  %v531_v63 = vpack.c.bf16 %v113_v61, %v112_v60  ;;  %v96_v0 = vld [vmem:[%s908_s1 + $0x240] sm:$0xff]  ;;  %v97_v1 = vld [vmem:[%s908_s1 + $0x248] sm:$0xff]  ;;  %v114_v2 = vld [vmem:[%s908_s1 + $0x2d0] sm:$0xff] }
  0x28   :  { %v115_v3 = vld [vmem:[%s908_s1 + $0x2d8] sm:$0xff]  ;;  %v533_v4 = vpack.c.bf16 %v97_v1, %v96_v0  ;;  %v98_v6 = vld [vmem:[%s908_s1 + $0x250] sm:$0xff]  ;;  %v116_v8 = vld [vmem:[%s908_s1 + $0x2e0] sm:$0xff] }
  0x29   :  { %v535_v5 = vpack.c.bf16 %v115_v3, %v114_v2  ;;  %v99_v7 = vld [vmem:[%s908_s1 + $0x258] sm:$0xff]  ;;  %v117_v9 = vld [vmem:[%s908_s1 + $0x2e8] sm:$0xff]  ;;  %v100_v12 = vld [vmem:[%s908_s1 + $0x260] sm:$0xff] }
  0x2a   :  { %522 = vmatpush3.bf16.msra.mxu0 %v521_v50  ;;  %v537_v10 = vpack.c.bf16 %v99_v7, %v98_v6  ;;  %v539_v11 = vpack.c.bf16 %v117_v9, %v116_v8  ;;  %v101_v13 = vld [vmem:[%s908_s1 + $0x268] sm:$0xff]  ;;  %v118_v14 = vld [vmem:[%s908_s1 + $0x2f0] sm:$0xff]  ;;  %v119_v15 = vld [vmem:[%s908_s1 + $0x2f8] sm:$0xff] }
  0x2b   :  { %524 = vmatprep.subr.bf16.mxu0 %v523_v51  ;;  %v541_v16 = vpack.c.bf16 %v101_v13, %v100_v12  ;;  %v543_v17 = vpack.c.bf16 %v119_v15, %v118_v14  ;;  %v102_v18 = vld [vmem:[%s908_s1 + $0x270] sm:$0xff]  ;;  %v103_v19 = vld [vmem:[%s908_s1 + $0x278] sm:$0xff]  ;;  %v22_v21 = vld [vmem:[%s907_s0 + $0x20] sm:$0xff]  ;;  %s573_s1 = smov [#allocation2]  }
  0x2c   :  { %v545_v20 = vpack.c.bf16 %v103_v19, %v102_v18  ;;  %s338_s17 = sshll.u32 %s573_s1, 4  ;;  %s339_s17 = int_to_ptr.vmem [resolvable:$true] %s338_s17 }
  0x2d   :  { %s549_s18 = scalar_lea.vmem %s339_s17, 128  ;;  %p554_p1 = scmp.lt.s32.totalorder %s339_s17, %s339_s17 }
  0x2e   :  { %526 = vmatpush3.bf16.msra.mxu0 %v525_v56  ;;  %p550_p0 = scmp.ne.s32.totalorder %s339_s17, %s549_s18  ;;  %p555_p2 = scmp.lt.s32.totalorder %s549_s18, %s549_s18 }
  0x2f   :  { %528 = vmatprep.subr.bf16.mxu0 %v527_v57 }
  0x30   :  { %p556_p3 = por %p555_p2, %p554_p1 }
  0x32   :  { %530 = vmatpush3.bf16.msra.mxu0 %v529_v62  ;;  %p557_p4 = pnand %p556_p3, %p550_p0 }
  0x33   :  { %532 = vmatprep.subr.bf16.mxu0 %v531_v63 }
  0x36   :  { %534 = vmatpush3.bf16.msra.mxu0 %v533_v4 }
  0x37   :  { %536 = vmatprep.subr.bf16.mxu0 %v535_v5 }
  0x3a   :  { %538 = vmatpush3.bf16.msra.mxu0 %v537_v10 }
  0x3b   :  { %540 = vmatprep.subr.bf16.mxu0 %v539_v11 }
  0x3e   :  { %542 = vmatpush3.bf16.msra.mxu0 %v541_v16 }
  0x3f   :  { %544 = vmatprep.subr.bf16.mxu0 %v543_v17 }
  0x42   :  { %546 = vmatpush3.bf16.msra.mxu0 %v545_v20 }
  0x45   :  { %325 = vmatmul.mubr.f32.vlgmr.msra.gmra.mrb[2].mxu0 %v22_v21 }
  0xf8   :  { %v378_v22 = vpop.f32.mrb[0].mxu0 }
  0xf9   :  { %v413_v23 = vpop.f32.mrb[0].mxu1  ;;  %v379_v24 = vpop.f32.mrb[1].mxu0 }
  0xfa   :  { %v380_v25 = vadd.f32 %v379_v24, %v378_v22  ;;  %v414_v26 = vpop.f32.mrb[1].mxu1 }
  0xfb   :  { %v415_v27 = vadd.f32 %v414_v26, %v413_v23 }
  0xfd   :  { %v257_v28 = vadd.f32 %v415_v27, %v380_v25 }
 0x118   :  { %v448_v29 = vpop.f32.mrb[2].mxu0 }
 0x119   :  { %v449_v30 = vpop.f32.mrb[3].mxu0 }
 0x11a   :  { %v450_v31 = vadd.f32 %v449_v30, %v448_v29 }
 0x11c   :  { %v327_v32 = vadd.f32 %v450_v31, %v257_v28 }
 0x11e   :  { %331 = vst [vmem:[#allocation2] sm:$0xff] %v327_v32 }
 0x11f   :  { %560 = shalt.err (!%p557_p4)
}
 0x120   :  { %s561_s20 = scalar_lea.hbm %s909_s2, 128 }
 0x121   :  { %p562_p5 = scmp.ne.s32.totalorder %s909_s2, %s561_s20  ;;  %p565_p6 = scmp.lt.u32.totalorder %s561_s20, %s909_s2 }
 0x123   :  { %p567_p7 = pnand %p565_p6, %p562_p5 }
 0x125   :  { %570 = shalt.err (!%p567_p7)
}
 0x126   :  { %341 = dma.vmem_to_hbm [thread:$0]  %s339_s17, 128, %s909_s2, [#allocation3]  }
 0x127   :  { %571 = dma.done.wait [#allocation3], 128  }
 0x128   :  { %572 = vsyncadd [#allocation3], 4294967168 }
 0x129   :  { %345 = vsyncpa [#allocation3], 1 }

// kernel: torchdrug_gcn_forward.4
= control target key start
LH: loop header
LB: loop body
LE: loop exit
PB: predicated region body
PF: predicated region fallthrough
CT: control target
= control target key end

     0   :  { %s1157_s15 = smov 0   ;;  %s1159_s16 = smov 0   ;;  %s1262_s0 = inlined_call_operand.vmem [shape: bf16[6,128,128], index: 0, kind: input, shape index: {}]   ;;  %s1263_s1 = inlined_call_operand.vmem [shape: bf16[6,128,128], index: 1, kind: input, shape index: {}]   ;;  %s1264_s2 = inlined_call_operand.vmem [shape: bf16[128,128], index: 2, kind: input, shape index: {}]   ;;  %s1265_s3 = inlined_call_operand.vmem [shape: f32[1,128], index: 3, kind: input, shape index: {}]   ;;  %s1266_s4 = inlined_call_operand.vmem [shape: f32[6,128,128], index: 4, kind: output, shape index: {}]  }
   0x1   :  { %s1161_s17 = smov 0  }
   0x2 LB: > { %s33_s18 = sadd.s32 1, %s1126_s16  ;;  %p927_p0 = scmp.ge.s32.totalorder %s1130_s17, 1  ;;  %s1130_s17 = sphi %s1161_s17, %s14_s17   ;;  %s1126_s16 = sphi %s1159_s16, %s1268_s16   ;;  %s1122_s15 = sphi %s1157_s15, %s1267_s15  }
   0x3   : > { %p35_p1 = scmp.ge.s32.totalorder %s33_s18, 6  ;;  %p212_p2 = scmp.lt.s32.totalorder %s1130_s17, 7 }
   0x5   : > { %s1270_s18 = smov (%p35_p1, %s33_s18), 0  ;;  %p213_p3 = pnand %p927_p0, %p212_p2 }
   0x6   : > { %p259_p4 = scmp.lt.s32.totalorder (!%p213_p3), %s1122_s15, 5  ;;  %v1100_v0 = vld [vmem:[%s1264_s2] sm:$0xff] (!%p213_p3)   ;;  %v1101_v1 = vld [vmem:[%s1264_s2 + $0x8] sm:$0xff] (!%p213_p3)   ;;  %v1102_v2 = vld [vmem:[%s1264_s2 + $0x10] sm:$0xff] (!%p213_p3)  }
   0x7   : > { %216 = sbr.rel (%p213_p3) target bundleno = 512 (0x200), region = 36  ;;  %1028 = vmatprep.subr.bf16.mxu1 (!%p213_p3), %v1100_v0  ;;  %v1103_v5 = vld [vmem:[%s1264_s2 + $0x18] sm:$0xff] (!%p213_p3)   ;;  %v1104_v7 = vld [vmem:[%s1264_s2 + $0x20] sm:$0xff] (!%p213_p3)   ;;  %v1105_v10 = vld [vmem:[%s1264_s2 + $0x28] sm:$0xff] (!%p213_p3)  }
   0x8   : > { %1029 = vmatpush3.bf16.msra.mxu1 (!%p213_p3), %v1100_v0  ;;  %v1106_v13 = vld [vmem:[%s1264_s2 + $0x30] sm:$0xff] (!%p213_p3)   ;;  %v1107_v23 = vld [vmem:[%s1264_s2 + $0x38] sm:$0xff] (!%p213_p3)   ;;  %v950_v48 = vld [vmem:[%s1265_s3] ss:$0 sm:$0xff] (!%p213_p3) }
   0x9   : > { %1030 = vmatprep.subr.bf16.mxu1 (!%p213_p3), %v1101_v1 }
   0xc   : > { %1031 = vmatpush3.bf16.msra.mxu1 (!%p213_p3), %v1101_v1 }
   0xd   : > { %1032 = vmatprep.subr.bf16.mxu1 (!%p213_p3), %v1102_v2 }
   0xe   : > { %s1272_s15 = smov (!%p259_p4, %s1122_s15), 5 }
   0xf   : > { %s961_s23 = sshll.u32 %s1272_s15, 6  ;;  %s963_s22 = sshll.u32 %s1272_s15, 7 }
  0x10   : > { %s1190_s28 = scalar_lea.vmem %s1263_s1, %s961_s23  ;;  %s1201_s7 = scalar_lea.vmem %s1262_s0, %s961_s23  ;;  %1033 = vmatpush3.bf16.msra.mxu1 %v1102_v2 }
  0x11   : > { %v1084_v3 = vld [vmem:[%s1190_s28] sm:$0xff]   ;;  %v1085_v4 = vld [vmem:[%s1190_s28 + $0x8] sm:$0xff]   ;;  %v1086_v6 = vld [vmem:[%s1190_s28 + $0x10] sm:$0xff]   ;;  %1034 = vmatprep.subr.bf16.mxu1 %v1103_v5  ;;  %s1235_s25 = scalar_lea.vmem %s1266_s4, %s963_s22 }
  0x12   : > { %996 = vmatprep.subr.bf16.mxu0 %v1084_v3  ;;  %v1087_v8 = vld [vmem:[%s1190_s28 + $0x18] sm:$0xff]   ;;  %v1092_v9 = vld [vmem:[%s1201_s7] sm:$0xff]   ;;  %v1089_v12 = vld [vmem:[%s1190_s28 + $0x28] sm:$0xff]  }
  0x13   : > { %997 = vmatpush3.bf16.msra.mxu0 %v1084_v3  ;;  %1012 = vmatprep.mubr.bf16.mxu0 %v1092_v9  ;;  %v1088_v11 = vld [vmem:[%s1190_s28 + $0x20] sm:$0xff]   ;;  %v1090_v14 = vld [vmem:[%s1190_s28 + $0x30] sm:$0xff]   ;;  %v1091_v15 = vld [vmem:[%s1190_s28 + $0x38] sm:$0xff]  }
  0x14   : > { %998 = vmatprep.subr.bf16.mxu0 %v1085_v4  ;;  %1035 = vmatpush3.bf16.msra.mxu1 %v1103_v5  ;;  %v1093_v16 = vld [vmem:[%s1201_s7 + $0x8] sm:$0xff]   ;;  %v1094_v17 = vld [vmem:[%s1201_s7 + $0x10] sm:$0xff]   ;;  %v1095_v18 = vld [vmem:[%s1201_s7 + $0x18] sm:$0xff]  }
  0x15   : > { %1036 = vmatprep.subr.bf16.mxu1 %v1104_v7  ;;  %v1096_v19 = vld [vmem:[%s1201_s7 + $0x20] sm:$0xff]   ;;  %v1097_v20 = vld [vmem:[%s1201_s7 + $0x28] sm:$0xff]   ;;  %v1098_v21 = vld [vmem:[%s1201_s7 + $0x30] sm:$0xff]  }
  0x16   : > { %v1099_v22 = vld [vmem:[%s1201_s7 + $0x38] sm:$0xff]  }
  0x17   : > { %999 = vmatpush3.bf16.msra.mxu0 %v1085_v4 }
  0x18   : > { %1000 = vmatprep.subr.bf16.mxu0 %v1086_v6  ;;  %1037 = vmatpush3.bf16.msra.mxu1 %v1104_v7 }
  0x19   : > { %1038 = vmatprep.subr.bf16.mxu1 %v1105_v10 }
  0x1b   : > { %1001 = vmatpush3.bf16.msra.mxu0 %v1086_v6 }
  0x1c   : > { %1002 = vmatprep.subr.bf16.mxu0 %v1087_v8  ;;  %1039 = vmatpush3.bf16.msra.mxu1 %v1105_v10 }
  0x1d   : > { %1040 = vmatprep.subr.bf16.mxu1 %v1106_v13 }
  0x1f   : > { %1003 = vmatpush3.bf16.msra.mxu0 %v1087_v8 }
  0x20   : > { %1004 = vmatprep.subr.bf16.mxu0 %v1088_v11  ;;  %1041 = vmatpush3.bf16.msra.mxu1 %v1106_v13 }
  0x21   : > { %1042 = vmatprep.subr.bf16.mxu1 %v1107_v23 }
  0x23   : > { %1005 = vmatpush3.bf16.msra.mxu0 %v1088_v11 }
  0x24   : > { %1006 = vmatprep.subr.bf16.mxu0 %v1089_v12  ;;  %1043 = vmatpush3.bf16.msra.mxu1 %v1107_v23 }
  0x27   : > { %1007 = vmatpush3.bf16.msra.mxu0 %v1089_v12 }
  0x28   : > { %1008 = vmatprep.subr.bf16.mxu0 %v1090_v14 }
  0x2b   : > { %1009 = vmatpush3.bf16.msra.mxu0 %v1090_v14 }
  0x2c   : > { %1010 = vmatprep.subr.bf16.mxu0 %v1091_v15 }
  0x2f   : > { %1011 = vmatpush3.bf16.msra.mxu0 %v1091_v15 }
  0x32   : > { %1013 = vmatmul.mubr.bf16.vlgmr.msra.gmra.mrb[0].mxu0 %v1093_v16 }
  0x33   : > { %1016 = vmatprep.mubr.bf16.mxu0 %v1094_v17 }
  0x3a   : > { %1017 = vmatmul.mubr.bf16.gmra.mrb[4].mxu0 %v1095_v18 }
  0x3b   : > { %1020 = vmatprep.mubr.bf16.mxu0 %v1096_v19 }
  0x42   : > { %1021 = vmatmul.mubr.bf16.gmra.mrb[8].mxu0 %v1097_v20 }
  0x43   : > { %1024 = vmatprep.mubr.bf16.mxu0 %v1098_v21 }
  0x4a   : > { %1025 = vmatmul.mubr.bf16.gmra.mrb[12].mxu0 %v1099_v22 }
 0x105   : > { %v1014_v24 = vpop.f32.mrb[0].mxu0 }
 0x106   : > { %v490_v25 = vpop.f32.mrb[1].mxu0 }
 0x107   : > { %v1015_v26 = vpop.f32.mrb[2].mxu0 }
 0x108   : > { %v605_v27 = vpack.c.bf16 %v1015_v26, %v1014_v24  ;;  %v493_v28 = vpop.f32.mrb[3].mxu0 }
 0x109   : > { %v604_v29 = vpack.c.bf16 %v493_v28, %v490_v25 }
 0x10b   : > { %1044 = vmatprep.mubr.bf16.mxu1 %v604_v29 }
 0x10c   : > { %1045 = vmatmul.mubr.bf16.vlgmr.msra.gmra.mrb[0].mxu1 %v605_v27 }
 0x10d   : > { %v1018_v30 = vpop.f32.mrb[4].mxu0 }
 0x10e   : > { %v506_v31 = vpop.f32.mrb[5].mxu0 }
 0x10f   : > { %v1019_v32 = vpop.f32.mrb[6].mxu0 }
 0x110   : > { %v607_v33 = vpack.c.bf16 %v1019_v32, %v1018_v30  ;;  %v509_v34 = vpop.f32.mrb[7].mxu0 }
 0x111   : > { %v606_v35 = vpack.c.bf16 %v509_v34, %v506_v31 }
 0x113   : > { %1048 = vmatprep.mubr.bf16.mxu1 %v606_v35 }
 0x114   : > { %1049 = vmatmul.mubr.bf16.gmra.mrb[4].mxu1 %v607_v33 }
 0x115   : > { %v1022_v36 = vpop.f32.mrb[8].mxu0 }
 0x116   : > { %v522_v37 = vpop.f32.mrb[9].mxu0 }
 0x117   : > { %v1023_v38 = vpop.f32.mrb[10].mxu0 }
 0x118   : > { %v609_v39 = vpack.c.bf16 %v1023_v38, %v1022_v36  ;;  %v525_v40 = vpop.f32.mrb[11].mxu0 }
 0x119   : > { %v608_v41 = vpack.c.bf16 %v525_v40, %v522_v37 }
 0x11b   : > { %1052 = vmatprep.mubr.bf16.mxu1 %v608_v41 }
 0x11c   : > { %1053 = vmatmul.mubr.bf16.gmra.mrb[8].mxu1 %v609_v39 }
 0x11d   : > { %v1026_v42 = vpop.f32.mrb[12].mxu0 }
 0x11e   : > { %v538_v43 = vpop.f32.mrb[13].mxu0 }
 0x11f   : > { %v1027_v44 = vpop.f32.mrb[14].mxu0 }
 0x120   : > { %v611_v45 = vpack.c.bf16 %v1027_v44, %v1026_v42  ;;  %v541_v46 = vpop.f32.mrb[15].mxu0 }
 0x121   : > { %v610_v47 = vpack.c.bf16 %v541_v46, %v538_v43 }
 0x123   : > { %1056 = vmatprep.mubr.bf16.mxu1 %v610_v47 }
 0x124   : > { %1057 = vmatmul.mubr.bf16.gmra.mrb[12].mxu1 %v611_v45 }
 0x1df   : > { %v1046_v49 = vpop.f32.mrb[0].mxu1 }
 0x1e0   : > { %v726_v50 = vadd.f32 %v1046_v49, %v950_v48  ;;  %v717_v51 = vpop.f32.mrb[1].mxu1 }
 0x1e1   : > { %v718_v52 = vadd.f32 %v950_v48, %v717_v51  ;;  %v1047_v53 = vpop.f32.mrb[2].mxu1 }
 0x1e2   : > { %v782_v54 = vmax.f32 %v726_v50, 0.0  ;;  %v729_v55 = vadd.f32 %v1047_v53, %v950_v48  ;;  %v720_v56 = vpop.f32.mrb[3].mxu1 }
 0x1e3   : > { %v780_v57 = vmax.f32 %v718_v52, 0.0  ;;  %v721_v58 = vadd.f32 %v950_v48, %v720_v56 }
 0x1e4   : > { %798 = vst [vmem:[%s1235_s25 + $0x10] sm:$0xff] %v782_v54  ;;  %v783_v59 = vmax.f32 %v729_v55, 0.0 }
 0x1e5   : > { %796 = vst [vmem:[%s1235_s25] sm:$0xff] %v780_v57  ;;  %v781_v60 = vmax.f32 %v721_v58, 0.0 }
 0x1e6   : > { %799 = vst [vmem:[%s1235_s25 + $0x18] sm:$0xff] %v783_v59 }
 0x1e7   : > { %797 = vst [vmem:[%s1235_s25 + $0x8] sm:$0xff] %v781_v60  ;;  %v1050_v61 = vpop.f32.mrb[4].mxu1 }
 0x1e8   : > { %v742_v62 = vadd.f32 %v1050_v61, %v950_v48  ;;  %v733_v63 = vpop.f32.mrb[5].mxu1 }
 0x1e9   : > { %v734_v0 = vadd.f32 %v950_v48, %v733_v63  ;;  %v1051_v1 = vpop.f32.mrb[6].mxu1 }
 0x1ea   : > { %v786_v2 = vmax.f32 %v742_v62, 0.0  ;;  %v745_v3 = vadd.f32 %v1051_v1, %v950_v48  ;;  %v736_v4 = vpop.f32.mrb[7].mxu1 }
 0x1eb   : > { %v784_v5 = vmax.f32 %v734_v0, 0.0  ;;  %v737_v6 = vadd.f32 %v950_v48, %v736_v4 }
 0x1ec   : > { %802 = vst [vmem:[%s1235_s25 + $0x30] sm:$0xff] %v786_v2  ;;  %v787_v7 = vmax.f32 %v745_v3, 0.0 }
 0x1ed   : > { %800 = vst [vmem:[%s1235_s25 + $0x20] sm:$0xff] %v784_v5  ;;  %v785_v8 = vmax.f32 %v737_v6, 0.0 }
 0x1ee   : > { %803 = vst [vmem:[%s1235_s25 + $0x38] sm:$0xff] %v787_v7 }
 0x1ef   : > { %801 = vst [vmem:[%s1235_s25 + $0x28] sm:$0xff] %v785_v8  ;;  %v1054_v9 = vpop.f32.mrb[8].mxu1 }
 0x1f0   : > { %v758_v10 = vadd.f32 %v1054_v9, %v950_v48  ;;  %v749_v11 = vpop.f32.mrb[9].mxu1 }
 0x1f1   : > { %v750_v12 = vadd.f32 %v950_v48, %v749_v11  ;;  %v1055_v13 = vpop.f32.mrb[10].mxu1 }
 0x1f2   : > { %v790_v14 = vmax.f32 %v758_v10, 0.0  ;;  %v761_v15 = vadd.f32 %v1055_v13, %v950_v48  ;;  %v752_v16 = vpop.f32.mrb[11].mxu1 }
 0x1f3   : > { %v788_v17 = vmax.f32 %v750_v12, 0.0  ;;  %v753_v18 = vadd.f32 %v950_v48, %v752_v16 }
 0x1f4   : > { %806 = vst [vmem:[%s1235_s25 + $0x50] sm:$0xff] %v790_v14  ;;  %v791_v19 = vmax.f32 %v761_v15, 0.0 }
 0x1f5   : > { %804 = vst [vmem:[%s1235_s25 + $0x40] sm:$0xff] %v788_v17  ;;  %v789_v20 = vmax.f32 %v753_v18, 0.0 }
 0x1f6   : > { %807 = vst [vmem:[%s1235_s25 + $0x58] sm:$0xff] %v791_v19 }
 0x1f7   : > { %805 = vst [vmem:[%s1235_s25 + $0x48] sm:$0xff] %v789_v20  ;;  %v1058_v21 = vpop.f32.mrb[12].mxu1 }
 0x1f8   : > { %v774_v22 = vadd.f32 %v1058_v21, %v950_v48  ;;  %v765_v23 = vpop.f32.mrb[13].mxu1 }
 0x1f9   : > { %v766_v24 = vadd.f32 %v950_v48, %v765_v23  ;;  %v1059_v25 = vpop.f32.mrb[14].mxu1 }
 0x1fa   : > { %v794_v26 = vmax.f32 %v774_v22, 0.0  ;;  %v777_v27 = vadd.f32 %v1059_v25, %v950_v48  ;;  %v768_v28 = vpop.f32.mrb[15].mxu1 }
 0x1fb   : > { %v792_v29 = vmax.f32 %v766_v24, 0.0  ;;  %v769_v30 = vadd.f32 %v950_v48, %v768_v28 }
 0x1fc   : > { %810 = vst [vmem:[%s1235_s25 + $0x70] sm:$0xff] %v794_v26  ;;  %v795_v31 = vmax.f32 %v777_v27, 0.0 }
 0x1fd   : > { %808 = vst [vmem:[%s1235_s25 + $0x60] sm:$0xff] %v792_v29  ;;  %v793_v32 = vmax.f32 %v769_v30, 0.0 }
 0x1fe   : > { %811 = vst [vmem:[%s1235_s25 + $0x78] sm:$0xff] %v795_v31 }
 0x1ff   : > { %809 = vst [vmem:[%s1235_s25 + $0x68] sm:$0xff] %v793_v32 }
 0x200 PF: > { %s14_s17 = sadd.s32 1, %s1130_s17   ;;  %s1267_s15 = smov %s1126_s16 }
 0x201   : > { %p11_p5 = scmp.ge.s32.totalorder %s14_s17, 8   ;;  %s1268_s16 = smov %s1270_s18 }
 0x203   :  { %13 = sbr.rel (!%p11_p5) target bundleno = 2 (0x2), region = 77 }

// kernel: torchdrug_gcn_forward.3
= control target key start
LH: loop header
LB: loop body
LE: loop exit
PB: predicated region body
PF: predicated region fallthrough
CT: control target
= control target key end

     0   :  { %s1300_s15 = smov 0   ;;  %s1302_s16 = smov 0   ;;  %s1398_s0 = inlined_call_operand.vmem [shape: bf16[6,128,128], index: 0, kind: input, shape index: {}]   ;;  %s1399_s1 = inlined_call_operand.vmem [shape: bf16[6,128,128], index: 1, kind: input, shape index: {}]   ;;  %s1400_s2 = inlined_call_operand.vmem [shape: bf16[128,128], index: 2, kind: input, shape index: {}]   ;;  %s1401_s3 = inlined_call_operand.vmem [shape: f32[1,128], index: 3, kind: input, shape index: {}]   ;;  %s1402_s4 = inlined_call_operand.vmem [shape: bf16[6,128,128], index: 4, kind: output, shape index: {}]  }
   0x1   :  { %s1304_s17 = smov 0  }
   0x2 LB: > { %s33_s18 = sadd.s32 1, %s1269_s16  ;;  %p991_p0 = scmp.ge.s32.totalorder %s1273_s17, 1  ;;  %s1273_s17 = sphi %s1304_s17, %s14_s17   ;;  %s1269_s16 = sphi %s1302_s16, %s1404_s16   ;;  %s1265_s15 = sphi %s1300_s15, %s1403_s15  }
   0x3   : > { %p35_p1 = scmp.ge.s32.totalorder %s33_s18, 6  ;;  %p212_p2 = scmp.lt.s32.totalorder %s1273_s17, 7 }
   0x5   : > { %s1406_s18 = smov (%p35_p1, %s33_s18), 0  ;;  %p213_p3 = pnand %p991_p0, %p212_p2 }
   0x6   : > { %p259_p4 = scmp.lt.s32.totalorder (!%p213_p3), %s1265_s15, 5  ;;  %v1243_v0 = vld [vmem:[%s1400_s2] sm:$0xff] (!%p213_p3)   ;;  %v1244_v1 = vld [vmem:[%s1400_s2 + $0x8] sm:$0xff] (!%p213_p3)   ;;  %v1245_v2 = vld [vmem:[%s1400_s2 + $0x10] sm:$0xff] (!%p213_p3)  }
   0x7   : > { %216 = sbr.rel (%p213_p3) target bundleno = 514 (0x202), region = 36  ;;  %1171 = vmatprep.subr.bf16.mxu1 (!%p213_p3), %v1243_v0  ;;  %v1246_v5 = vld [vmem:[%s1400_s2 + $0x18] sm:$0xff] (!%p213_p3)   ;;  %v1247_v7 = vld [vmem:[%s1400_s2 + $0x20] sm:$0xff] (!%p213_p3)   ;;  %v1248_v10 = vld [vmem:[%s1400_s2 + $0x28] sm:$0xff] (!%p213_p3)  }
   0x8   : > { %1172 = vmatpush3.bf16.msra.mxu1 (!%p213_p3), %v1243_v0  ;;  %v1249_v13 = vld [vmem:[%s1400_s2 + $0x30] sm:$0xff] (!%p213_p3)   ;;  %v1250_v23 = vld [vmem:[%s1400_s2 + $0x38] sm:$0xff] (!%p213_p3)   ;;  %v1014_v48 = vld [vmem:[%s1401_s3] ss:$0 sm:$0xff] (!%p213_p3) }
   0x9   : > { %1173 = vmatprep.subr.bf16.mxu1 (!%p213_p3), %v1244_v1 }
   0xc   : > { %1174 = vmatpush3.bf16.msra.mxu1 (!%p213_p3), %v1244_v1 }
   0xd   : > { %1175 = vmatprep.subr.bf16.mxu1 (!%p213_p3), %v1245_v2 }
   0xe   : > { %s1408_s15 = smov (!%p259_p4, %s1265_s15), 5 }
   0xf   : > { %s1324_s23 = sshll.u32 %s1408_s15, 6 }
  0x10   : > { %s1333_s28 = scalar_lea.vmem %s1399_s1, %s1324_s23  ;;  %s1345_s7 = scalar_lea.vmem %s1398_s0, %s1324_s23  ;;  %1176 = vmatpush3.bf16.msra.mxu1 %v1245_v2 }
  0x11   : > { %v1227_v3 = vld [vmem:[%s1333_s28] sm:$0xff]   ;;  %v1228_v4 = vld [vmem:[%s1333_s28 + $0x8] sm:$0xff]   ;;  %v1229_v6 = vld [vmem:[%s1333_s28 + $0x10] sm:$0xff]   ;;  %1177 = vmatprep.subr.bf16.mxu1 %v1246_v5  ;;  %s1379_s24 = scalar_lea.vmem %s1402_s4, %s1324_s23 }
  0x12   : > { %1139 = vmatprep.subr.bf16.mxu0 %v1227_v3  ;;  %v1230_v8 = vld [vmem:[%s1333_s28 + $0x18] sm:$0xff]   ;;  %v1235_v9 = vld [vmem:[%s1345_s7] sm:$0xff]   ;;  %v1232_v12 = vld [vmem:[%s1333_s28 + $0x28] sm:$0xff]  }
  0x13   : > { %1140 = vmatpush3.bf16.msra.mxu0 %v1227_v3  ;;  %1155 = vmatprep.mubr.bf16.mxu0 %v1235_v9  ;;  %v1231_v11 = vld [vmem:[%s1333_s28 + $0x20] sm:$0xff]   ;;  %v1233_v14 = vld [vmem:[%s1333_s28 + $0x30] sm:$0xff]   ;;  %v1234_v15 = vld [vmem:[%s1333_s28 + $0x38] sm:$0xff]  }
  0x14   : > { %1141 = vmatprep.subr.bf16.mxu0 %v1228_v4  ;;  %1178 = vmatpush3.bf16.msra.mxu1 %v1246_v5  ;;  %v1236_v16 = vld [vmem:[%s1345_s7 + $0x8] sm:$0xff]   ;;  %v1237_v17 = vld [vmem:[%s1345_s7 + $0x10] sm:$0xff]   ;;  %v1238_v18 = vld [vmem:[%s1345_s7 + $0x18] sm:$0xff]  }
  0x15   : > { %1179 = vmatprep.subr.bf16.mxu1 %v1247_v7  ;;  %v1239_v19 = vld [vmem:[%s1345_s7 + $0x20] sm:$0xff]   ;;  %v1240_v20 = vld [vmem:[%s1345_s7 + $0x28] sm:$0xff]   ;;  %v1241_v21 = vld [vmem:[%s1345_s7 + $0x30] sm:$0xff]  }
  0x16   : > { %v1242_v22 = vld [vmem:[%s1345_s7 + $0x38] sm:$0xff]  }
  0x17   : > { %1142 = vmatpush3.bf16.msra.mxu0 %v1228_v4 }
  0x18   : > { %1143 = vmatprep.subr.bf16.mxu0 %v1229_v6  ;;  %1180 = vmatpush3.bf16.msra.mxu1 %v1247_v7 }
  0x19   : > { %1181 = vmatprep.subr.bf16.mxu1 %v1248_v10 }
  0x1b   : > { %1144 = vmatpush3.bf16.msra.mxu0 %v1229_v6 }
  0x1c   : > { %1145 = vmatprep.subr.bf16.mxu0 %v1230_v8  ;;  %1182 = vmatpush3.bf16.msra.mxu1 %v1248_v10 }
  0x1d   : > { %1183 = vmatprep.subr.bf16.mxu1 %v1249_v13 }
  0x1f   : > { %1146 = vmatpush3.bf16.msra.mxu0 %v1230_v8 }
  0x20   : > { %1147 = vmatprep.subr.bf16.mxu0 %v1231_v11  ;;  %1184 = vmatpush3.bf16.msra.mxu1 %v1249_v13 }
  0x21   : > { %1185 = vmatprep.subr.bf16.mxu1 %v1250_v23 }
  0x23   : > { %1148 = vmatpush3.bf16.msra.mxu0 %v1231_v11 }
  0x24   : > { %1149 = vmatprep.subr.bf16.mxu0 %v1232_v12  ;;  %1186 = vmatpush3.bf16.msra.mxu1 %v1250_v23 }
  0x27   : > { %1150 = vmatpush3.bf16.msra.mxu0 %v1232_v12 }
  0x28   : > { %1151 = vmatprep.subr.bf16.mxu0 %v1233_v14 }
  0x2b   : > { %1152 = vmatpush3.bf16.msra.mxu0 %v1233_v14 }
  0x2c   : > { %1153 = vmatprep.subr.bf16.mxu0 %v1234_v15 }
  0x2f   : > { %1154 = vmatpush3.bf16.msra.mxu0 %v1234_v15 }
  0x32   : > { %1156 = vmatmul.mubr.bf16.vlgmr.msra.gmra.mrb[0].mxu0 %v1236_v16 }
  0x33   : > { %1159 = vmatprep.mubr.bf16.mxu0 %v1237_v17 }
  0x3a   : > { %1160 = vmatmul.mubr.bf16.gmra.mrb[4].mxu0 %v1238_v18 }
  0x3b   : > { %1163 = vmatprep.mubr.bf16.mxu0 %v1239_v19 }
  0x42   : > { %1164 = vmatmul.mubr.bf16.gmra.mrb[8].mxu0 %v1240_v20 }
  0x43   : > { %1167 = vmatprep.mubr.bf16.mxu0 %v1241_v21 }
  0x4a   : > { %1168 = vmatmul.mubr.bf16.gmra.mrb[12].mxu0 %v1242_v22 }
 0x105   : > { %v1157_v24 = vpop.f32.mrb[0].mxu0 }
 0x106   : > { %v490_v25 = vpop.f32.mrb[1].mxu0 }
 0x107   : > { %v1158_v26 = vpop.f32.mrb[2].mxu0 }
 0x108   : > { %v605_v27 = vpack.c.bf16 %v1158_v26, %v1157_v24  ;;  %v493_v28 = vpop.f32.mrb[3].mxu0 }
 0x109   : > { %v604_v29 = vpack.c.bf16 %v493_v28, %v490_v25 }
 0x10b   : > { %1187 = vmatprep.mubr.bf16.mxu1 %v604_v29 }
 0x10c   : > { %1188 = vmatmul.mubr.bf16.vlgmr.msra.gmra.mrb[0].mxu1 %v605_v27 }
 0x10d   : > { %v1161_v30 = vpop.f32.mrb[4].mxu0 }
 0x10e   : > { %v506_v31 = vpop.f32.mrb[5].mxu0 }
 0x10f   : > { %v1162_v32 = vpop.f32.mrb[6].mxu0 }
 0x110   : > { %v607_v33 = vpack.c.bf16 %v1162_v32, %v1161_v30  ;;  %v509_v34 = vpop.f32.mrb[7].mxu0 }
 0x111   : > { %v606_v35 = vpack.c.bf16 %v509_v34, %v506_v31 }
 0x113   : > { %1191 = vmatprep.mubr.bf16.mxu1 %v606_v35 }
 0x114   : > { %1192 = vmatmul.mubr.bf16.gmra.mrb[4].mxu1 %v607_v33 }
 0x115   : > { %v1165_v36 = vpop.f32.mrb[8].mxu0 }
 0x116   : > { %v522_v37 = vpop.f32.mrb[9].mxu0 }
 0x117   : > { %v1166_v38 = vpop.f32.mrb[10].mxu0 }
 0x118   : > { %v609_v39 = vpack.c.bf16 %v1166_v38, %v1165_v36  ;;  %v525_v40 = vpop.f32.mrb[11].mxu0 }
 0x119   : > { %v608_v41 = vpack.c.bf16 %v525_v40, %v522_v37 }
 0x11b   : > { %1195 = vmatprep.mubr.bf16.mxu1 %v608_v41 }
 0x11c   : > { %1196 = vmatmul.mubr.bf16.gmra.mrb[8].mxu1 %v609_v39 }
 0x11d   : > { %v1169_v42 = vpop.f32.mrb[12].mxu0 }
 0x11e   : > { %v538_v43 = vpop.f32.mrb[13].mxu0 }
 0x11f   : > { %v1170_v44 = vpop.f32.mrb[14].mxu0 }
 0x120   : > { %v611_v45 = vpack.c.bf16 %v1170_v44, %v1169_v42  ;;  %v541_v46 = vpop.f32.mrb[15].mxu0 }
 0x121   : > { %v610_v47 = vpack.c.bf16 %v541_v46, %v538_v43 }
 0x123   : > { %1199 = vmatprep.mubr.bf16.mxu1 %v610_v47 }
 0x124   : > { %1200 = vmatmul.mubr.bf16.gmra.mrb[12].mxu1 %v611_v45 }
 0x1df   : > { %v1189_v49 = vpop.f32.mrb[0].mxu1 }
 0x1e0   : > { %v726_v50 = vadd.f32 %v1189_v49, %v1014_v48  ;;  %v717_v51 = vpop.f32.mrb[1].mxu1 }
 0x1e1   : > { %v718_v52 = vadd.f32 %v1014_v48, %v717_v51  ;;  %v1190_v53 = vpop.f32.mrb[2].mxu1 }
 0x1e2   : > { %v729_v54 = vadd.f32 %v1190_v53, %v1014_v48  ;;  %v720_v55 = vpop.f32.mrb[3].mxu1  ;;  %v782_v57 = vmax.f32 %v726_v50, 0.0 }
 0x1e3   : > { %v721_v56 = vadd.f32 %v1014_v48, %v720_v55  ;;  %v780_v59 = vmax.f32 %v718_v52, 0.0 }
 0x1e4   : > { %v783_v58 = vmax.f32 %v729_v54, 0.0 }
 0x1e5   : > { %v781_v60 = vmax.f32 %v721_v56, 0.0 }
 0x1e6   : > { %v1068_v61 = vpack.c.bf16 %v783_v58, %v782_v57 }
 0x1e7   : > { %v1063_v62 = vpack.c.bf16 %v781_v60, %v780_v59  ;;  %v1193_v63 = vpop.f32.mrb[4].mxu1 }
 0x1e8   : > { %1100 = vst [vmem:[%s1379_s24 + $0x8] sm:$0xff] %v1068_v61   ;;  %v742_v0 = vadd.f32 %v1193_v63, %v1014_v48  ;;  %v733_v1 = vpop.f32.mrb[5].mxu1 }
 0x1e9   : > { %1064 = vst [vmem:[%s1379_s24] sm:$0xff] %v1063_v62   ;;  %v734_v2 = vadd.f32 %v1014_v48, %v733_v1  ;;  %v1194_v3 = vpop.f32.mrb[6].mxu1 }
 0x1ea   : > { %v745_v4 = vadd.f32 %v1194_v3, %v1014_v48  ;;  %v736_v5 = vpop.f32.mrb[7].mxu1  ;;  %v786_v7 = vmax.f32 %v742_v0, 0.0 }
 0x1eb   : > { %v737_v6 = vadd.f32 %v1014_v48, %v736_v5  ;;  %v784_v9 = vmax.f32 %v734_v2, 0.0 }
 0x1ec   : > { %v787_v8 = vmax.f32 %v745_v4, 0.0 }
 0x1ed   : > { %v785_v10 = vmax.f32 %v737_v6, 0.0 }
 0x1ee   : > { %v1078_v11 = vpack.c.bf16 %v787_v8, %v786_v7 }
 0x1ef   : > { %v1073_v12 = vpack.c.bf16 %v785_v10, %v784_v9  ;;  %v1197_v13 = vpop.f32.mrb[8].mxu1 }
 0x1f0   : > { %1102 = vst [vmem:[%s1379_s24 + $0x18] sm:$0xff] %v1078_v11   ;;  %v758_v14 = vadd.f32 %v1197_v13, %v1014_v48  ;;  %v749_v15 = vpop.f32.mrb[9].mxu1 }
 0x1f1   : > { %1101 = vst [vmem:[%s1379_s24 + $0x10] sm:$0xff] %v1073_v12   ;;  %v750_v16 = vadd.f32 %v1014_v48, %v749_v15  ;;  %v1198_v17 = vpop.f32.mrb[10].mxu1 }
 0x1f2   : > { %v761_v18 = vadd.f32 %v1198_v17, %v1014_v48  ;;  %v752_v19 = vpop.f32.mrb[11].mxu1  ;;  %v790_v21 = vmax.f32 %v758_v14, 0.0 }
 0x1f3   : > { %v753_v20 = vadd.f32 %v1014_v48, %v752_v19  ;;  %v788_v23 = vmax.f32 %v750_v16, 0.0 }
 0x1f4   : > { %v791_v22 = vmax.f32 %v761_v18, 0.0 }
 0x1f5   : > { %v789_v24 = vmax.f32 %v753_v20, 0.0 }
 0x1f6   : > { %v1088_v25 = vpack.c.bf16 %v791_v22, %v790_v21 }
 0x1f7   : > { %v1083_v26 = vpack.c.bf16 %v789_v24, %v788_v23  ;;  %v1201_v27 = vpop.f32.mrb[12].mxu1 }
 0x1f8   : > { %1104 = vst [vmem:[%s1379_s24 + $0x28] sm:$0xff] %v1088_v25   ;;  %v774_v28 = vadd.f32 %v1201_v27, %v1014_v48  ;;  %v765_v29 = vpop.f32.mrb[13].mxu1 }
 0x1f9   : > { %1103 = vst [vmem:[%s1379_s24 + $0x20] sm:$0xff] %v1083_v26   ;;  %v766_v30 = vadd.f32 %v1014_v48, %v765_v29  ;;  %v1202_v31 = vpop.f32.mrb[14].mxu1 }
 0x1fa   : > { %v777_v32 = vadd.f32 %v1202_v31, %v1014_v48  ;;  %v768_v33 = vpop.f32.mrb[15].mxu1  ;;  %v794_v35 = vmax.f32 %v774_v28, 0.0 }
 0x1fb   : > { %v769_v34 = vadd.f32 %v1014_v48, %v768_v33  ;;  %v792_v37 = vmax.f32 %v766_v30, 0.0 }
 0x1fc   : > { %v795_v36 = vmax.f32 %v777_v32, 0.0 }
 0x1fd   : > { %v793_v38 = vmax.f32 %v769_v34, 0.0 }
 0x1fe   : > { %v1098_v39 = vpack.c.bf16 %v795_v36, %v794_v35 }
 0x1ff   : > { %v1093_v40 = vpack.c.bf16 %v793_v38, %v792_v37 }
 0x200   : > { %1106 = vst [vmem:[%s1379_s24 + $0x38] sm:$0xff] %v1098_v39  }
 0x201   : > { %1105 = vst [vmem:[%s1379_s24 + $0x30] sm:$0xff] %v1093_v40  }
 0x202 PF: > { %s14_s17 = sadd.s32 1, %s1273_s17   ;;  %s1403_s15 = smov %s1269_s16 }
 0x203   : > { %p11_p5 = scmp.ge.s32.totalorder %s14_s17, 8   ;;  %s1404_s16 = smov %s1406_s18 }
 0x205   :  { %13 = sbr.rel (!%p11_p5) target bundleno = 2 (0x2), region = 77 }

</bundles_post_ra>
